<compile_context>
chip_gen: v5e
topology: v5e:2x2
jax: 0.10.0
libtpu: 0.0.40
codegen_flags: <defaults>
</compile_context>

<pallas_src>
import functools

import jax
import jax.numpy as jnp
from jax.experimental import pallas as pl
from jax.experimental.pallas import tpu as pltpu


# ---------------------------------------------------------------------------
# Shared GRU-cell + output-Linear math (operates on loaded VMEM values).
# Gate order on the leading axis of the split weights: (r, z, n) — PyTorch.
# ---------------------------------------------------------------------------
def _gru_out_step(emb_ref, wih_e_ref, whh_ref, bhh_ref, wout_ref, bout_ref,
                  onehot, h, gi_ctx):
    """onehot: [B,V] f32; h: [B,H] f32; gi_ctx: 3 x [B,H] f32 (hoisted ctx+b_ih).

    Returns (ret [B,V] f32, h_new [B,H] f32)."""
    # Embedding gather as a one-hot matmul on the MXU; relu(E[token]).
    emb = jax.nn.relu(
        jnp.dot(onehot, emb_ref[...], preferred_element_type=jnp.float32))

    gi = [jnp.dot(emb, wih_e_ref[g], preferred_element_type=jnp.float32) + gi_ctx[g]
          for g in range(3)]
    gh = [jnp.dot(h, whh_ref[g], preferred_element_type=jnp.float32) + bhh_ref[g]
          for g in range(3)]

    r = jax.nn.sigmoid(gi[0] + gh[0])
    z = jax.nn.sigmoid(gi[1] + gh[1])
    n = jnp.tanh(gi[2] + r * gh[2])
    h_new = (1.0 - z) * n + z * h

    ret = jnp.dot(h_new, wout_ref[...],
                  preferred_element_type=jnp.float32) + bout_ref[...]
    return ret, h_new


# ---------------------------------------------------------------------------
# Fused decoder kernel (k == 1 path): grid=(max_decode_steps,)
# ---------------------------------------------------------------------------
def _fused_decode_kernel(start_ref,                         # SMEM (1,) int32 (prefetch)
                         emb_ref, inp_ref,
                         wih_e_ref, wih_c_ref, bih_ref,
                         whh_ref, bhh_ref,
                         wout_ref, bout_ref,
                         g_ref, gum_ref, h0_ref,
                         out_ref, words_ref,
                         h_sc, onehot_sc, gictx_sc):
    B, V = g_ref.shape
    t = pl.program_id(0)
    lane = jax.lax.broadcasted_iota(jnp.int32, (B, V), 1)

    @pl.when(t == 0)
    def _init():
        h_sc[...] = h0_ref[...].astype(jnp.float32)
        # one-hot of the <s> start token
        onehot_sc[...] = (lane == start_ref[0]).astype(jnp.float32)
        # hoisted, step-invariant context contribution: inp @ W_ih_ctx[g] + b_ih[g]
        ctx = inp_ref[...].astype(jnp.float32)
        for g in range(3):
            gictx_sc[g] = (jnp.dot(ctx, wih_c_ref[g],
                                   preferred_element_type=jnp.float32)
                           + bih_ref[g])

    h = h_sc[...]
    onehot = onehot_sc[...]
    gi_ctx = [gictx_sc[g] for g in range(3)]

    ret, h_new = _gru_out_step(emb_ref, wih_e_ref, whh_ref, bhh_ref,
                               wout_ref, bout_ref, onehot, h, gi_ctx)

    out_ref[...] = ret          # ret_decoder_output for this step

    # multinomial(softmax(logits restricted to graph entries)) == Gumbel-max
    # over graph-masked logits.
    # TODO(synk): matches torch.multinomial in distribution, not its RNG stream.
    logits = jnp.where(g_ref[...] > 0.0, ret, jnp.float32(-1e30))
    score = logits + gum_ref[...]
    m = jnp.max(score, axis=-1, keepdims=True)
    lane_f = lane.astype(jnp.float32)
    idx = jnp.min(jnp.where(score >= m, lane_f, jnp.float32(V)),
                  axis=-1, keepdims=True).astype(jnp.int32)        # [B,1] first argmax
    words_ref[...] = idx

    # carry state to the next decode step (stays in VMEM)
    onehot_sc[...] = (lane == idx).astype(jnp.float32)
    h_sc[...] = h_new


def _full_spec(shape):
    zeros = (0,) * len(shape)
    return pl.BlockSpec(shape, lambda t, s: zeros)


@functools.partial(jax.jit, static_argnames=("max_decode_steps",))
def _fused_decode(params, inp, h0, graphs, start_tok, gumbel, *, max_decode_steps):
    B, H = h0.shape
    V, E = params["embedding"].shape
    C = inp.shape[1]
    T = max_decode_steps

    flops = (2 * T * (B * V * E + 3 * B * E * H + 3 * B * H * H + B * H * V)
             + 2 * 3 * B * C * H)
    inputs = (params["embedding"], inp, params["w_ih_emb"], params["w_ih_ctx"],
              params["b_ih"], params["w_hh"], params["b_hh"], params["w_out"],
              params["b_out"], graphs, gumbel, h0)
    bytes_accessed = sum(int(a.size) * 4 for a in inputs) + T * B * V * 4 + T * B * 4

    grid_spec = pltpu.PrefetchScalarGridSpec(
        num_scalar_prefetch=1,
        grid=(T,),
        in_specs=[
            _full_spec((V, E)),          # embedding table (VMEM-resident, ~16 KiB)
            _full_spec((B, C)),          # context input (used at step 0 only)
            _full_spec((3, E, H)),       # W_ih (embedding half), per-gate
            _full_spec((3, C, H)),       # W_ih (context half), per-gate
            _full_spec((3, 1, H)),       # b_ih
            _full_spec((3, H, H)),       # W_hh
            _full_spec((3, 1, H)),       # b_hh
            _full_spec((H, V)),          # W_out
            _full_spec((1, V)),          # b_out
            _full_spec((B, V)),          # graph admissibility mask
            pl.BlockSpec((None, B, V), lambda t, s: (t, 0, 0)),   # gumbel[t]
            _full_spec((B, H)),          # initial hidden
        ],
        out_specs=(
            pl.BlockSpec((None, B, V), lambda t, s: (t, 0, 0)),   # logits[t]
            pl.BlockSpec((None, B, 1), lambda t, s: (t, 0, 0)),   # words[t]
        ),
        scratch_shapes=[
            pltpu.VMEM((B, H), jnp.float32),       # hidden state (resident)
            pltpu.VMEM((B, V), jnp.float32),       # current-token one-hot
            pltpu.VMEM((3, B, H), jnp.float32),    # hoisted ctx gate pre-activations
        ],
    )

    outputs, words = pl.pallas_call(
        _fused_decode_kernel,
        grid_spec=grid_spec,
        out_shape=(
            jax.ShapeDtypeStruct((T, B, V), jnp.float32),   # ret_decoder_output per step
            jax.ShapeDtypeStruct((T, B, 1), jnp.int32),     # sampled token ids
        ),
        compiler_params=pltpu.CompilerParams(
            dimension_semantics=("arbitrary",)),
        cost_estimate=pl.CostEstimate(
            flops=flops, transcendentals=T * 3 * B * H,
            bytes_accessed=bytes_accessed),
    )(start_tok,
      params["embedding"], inp.astype(jnp.float32),
      params["w_ih_emb"], params["w_ih_ctx"], params["b_ih"],
      params["w_hh"], params["b_hh"], params["w_out"], params["b_out"],
      graphs, gumbel, h0.astype(jnp.float32))

    return outputs, words[..., 0]


# ---------------------------------------------------------------------------
# k > 1 fallback: one GRU step per pallas_call, top-k sampling in JAX glue.
# ---------------------------------------------------------------------------
def _topk_step_kernel(onehot_ref, h_ref, gictx_ref,
                      emb_ref, wih_e_ref, whh_ref, bhh_ref,
                      wout_ref, bout_ref, g_ref,
                      masked_ref, hnew_ref):
    gi_ctx = [gictx_ref[g] for g in range(3)]
    ret, h_new = _gru_out_step(emb_ref, wih_e_ref, whh_ref, bhh_ref,
                               wout_ref, bout_ref,
                               onehot_ref[...], h_ref[...].astype(jnp.float32),
                               gi_ctx)
    masked_ref[...] = ret * g_ref[...]       # decoder_output = ret * graphs
    hnew_ref[...] = h_new


def _topk_step(onehot, h, gi_ctx, params, graphs):
    B, H = h.shape
    V = params["w_out"].shape[1]
    vmem = pl.BlockSpec(memory_space=pltpu.MemorySpace.VMEM)
    return pl.pallas_call(
        _topk_step_kernel,
        out_shape=(jax.ShapeDtypeStruct((B, V), jnp.float32),
                   jax.ShapeDtypeStruct((B, H), jnp.float32)),
        in_specs=[vmem] * 10,
        out_specs=(vmem, vmem),
    )(onehot, h, gi_ctx, params["embedding"], params["w_ih_emb"],
      params["w_hh"], params["b_hh"], params["w_out"], params["b_out"], graphs)


# ---------------------------------------------------------------------------
# ObjectDecoder.forward
# ---------------------------------------------------------------------------
def object_decoder_forward(params, inp, input_hidden, vocab, vocab_rev,
                           decode_steps_t, graphs, *, key, k=1,
                           max_decode_steps=2, batch_size=None):
    del vocab, decode_steps_t, batch_size      # unused, as in the torch module
    B = inp.shape[0]
    V = params["w_out"].shape[1]
    inp = inp.astype(jnp.float32)
    h = input_hidden.astype(jnp.float32)       # (B, H); single GRU layer — layer dim implicit
    graphs = graphs.astype(jnp.float32)
    # TODO(synk): graph_dropout bernoulli mask on `graphs` is skipped (inference mode).

    if k == 1:
        start = jnp.full((1,), vocab_rev['<s>'], dtype=jnp.int32)
        gumbel = jax.random.gumbel(key, (max_decode_steps, B, V), jnp.float32)
        return _fused_decode(params, inp, h, graphs, start, gumbel,
                             max_decode_steps=max_decode_steps)

    # ---- k > 1: per-step kernel + host-side top-k categorical sampling ----
    gi_ctx = (jnp.einsum('bc,gch->gbh', inp, params["w_ih_ctx"],
                         preferred_element_type=jnp.float32)
              + params["b_ih"])                                      # (3, B, H), hoisted
    tok = jnp.full((B,), vocab_rev['<s>'], dtype=jnp.int32)
    all_outputs, all_words = [], []
    for _ in range(max_decode_steps):
        onehot = jax.nn.one_hot(tok, V, dtype=jnp.float32)
        masked, h = _topk_step(onehot, h, gi_ctx, params, graphs)
        key, sub = jax.random.split(key)
        topv, topi = jax.lax.top_k(masked, k)
        p = jax.nn.softmax(topv, axis=1)
        # np.random.choice(topi, p=softmax(topv)) == Gumbel-max over log p.
        g = jax.random.gumbel(sub, p.shape, dtype=jnp.float32)
        sel = jnp.argmax(jnp.log(p) + g, axis=-1)
        tok = jnp.take_along_axis(topi, sel[:, None], axis=1)[:, 0].astype(jnp.int32)
        all_outputs.append(masked)
        all_words.append(tok)
    return jnp.stack(all_outputs), jnp.stack(all_words)


# ---------------------------------------------------------------------------
# Deterministic parameter construction (shapes follow the module __init__).
# GRU weights are stored pre-split per gate (r, z, n) and per input half.
# ---------------------------------------------------------------------------
def make_params(key, input_size, hidden_size, output_size):
    E = hidden_size                # embedding dim = hidden_size
    C = input_size                 # context ("input") feature dim
    H = hidden_size
    V = output_size
    ks = jax.random.split(key, 8)
    s = 0.1
    return {
        "embedding": s * jax.random.normal(ks[0], (V, E), jnp.float32),
        "w_ih_emb":  s * jax.random.normal(ks[1], (3, E, H), jnp.float32),
        "w_ih_ctx":  s * jax.random.normal(ks[2], (3, C, H), jnp.float32),
        "b_ih":      s * jax.random.normal(ks[3], (3, 1, H), jnp.float32),
        "w_hh":      s * jax.random.normal(ks[4], (3, H, H), jnp.float32),
        "b_hh":      s * jax.random.normal(ks[5], (3, 1, H), jnp.float32),
        "w_out":     s * jax.random.normal(ks[6], (H, V), jnp.float32),
        "b_out":     s * jax.random.normal(ks[7], (1, V), jnp.float32),
    }


if __name__ == "__main__":
    B, INPUT, HIDDEN, VOCAB, K = 8, 32, 32, 128, 1

    root = jax.random.PRNGKey(0)
    k_param, k_inp, k_hid, k_graph, k_sample = jax.random.split(root, 5)

    params = make_params(k_param, INPUT, HIDDEN, VOCAB)

    inp = jax.random.normal(k_inp, (B, INPUT), jnp.float32)
    input_hidden = jax.random.normal(k_hid, (B, HIDDEN), jnp.float32)
    graphs = (jax.random.uniform(k_graph, (B, VOCAB)) > 0.5).astype(jnp.float32)
    graphs = graphs.at[:, 0].set(1.0)        # guarantee a non-empty graph per row

    vocab = {i: str(i) for i in range(VOCAB)}
    vocab_rev = {'<s>': 2}
    decode_steps_t = jnp.ones((B,), jnp.int32)

    outputs, words = object_decoder_forward(
        params, inp, input_hidden, vocab, vocab_rev, decode_steps_t, graphs,
        key=k_sample, k=K, batch_size=B)

    jax.block_until_ready((outputs, words))
    assert outputs.shape == (2, B, VOCAB) and words.shape == (2, B)
    assert bool(jnp.all((words >= 0) & (words < VOCAB)))
    # sampled tokens must be graph-admissible
    assert bool(jnp.all(jnp.take_along_axis(graphs, words.T, axis=1) > 0))
    print("KERNEL_OK")
</pallas_src>

<mosaic_0001>
module attributes {stable_mosaic.version = 11 : i64} {
  func.func @_fused_decode_kernel(%arg0: i32, %arg1: memref<1xi32, #tpu.memory_space<smem>>, %arg2: memref<128x32xf32, #tpu.memory_space<vmem>>, %arg3: memref<8x32xf32, #tpu.memory_space<vmem>>, %arg4: memref<3x32x32xf32, #tpu.memory_space<vmem>>, %arg5: memref<3x32x32xf32, #tpu.memory_space<vmem>>, %arg6: memref<3x1x32xf32, #tpu.memory_space<vmem>>, %arg7: memref<3x32x32xf32, #tpu.memory_space<vmem>>, %arg8: memref<3x1x32xf32, #tpu.memory_space<vmem>>, %arg9: memref<32x128xf32, #tpu.memory_space<vmem>>, %arg10: memref<1x128xf32, #tpu.memory_space<vmem>>, %arg11: memref<8x128xf32, #tpu.memory_space<vmem>>, %arg12: memref<1x8x128xf32, #tpu.memory_space<vmem>>, %arg13: memref<8x32xf32, #tpu.memory_space<vmem>>, %arg14: memref<1x8x128xf32, #tpu.memory_space<vmem>>, %arg15: memref<1x8x1xi32, #tpu.memory_space<vmem>>, %arg16: memref<8x32xf32, #tpu.memory_space<vmem>>, %arg17: memref<8x128xf32, #tpu.memory_space<vmem>>, %arg18: memref<3x8x32xf32, #tpu.memory_space<vmem>>) attributes {dimension_semantics = [#tpu.dimension_semantics<arbitrary>], iteration_bounds = array<i64: 2>, scalar_prefetch = 1 : i64, scratch_operands = 3 : i64, tpu.core_type = #tpu.core_type<tc>, window_params = [{pipeline_mode = #tpu.pipeline_mode<synchronous>, transform_indices = @transform_0, window_bounds = array<i64: 128, 32>}, {pipeline_mode = #tpu.pipeline_mode<synchronous>, transform_indices = @transform_1, window_bounds = array<i64: 8, 32>}, {pipeline_mode = #tpu.pipeline_mode<synchronous>, transform_indices = @transform_2, window_bounds = array<i64: 3, 32, 32>}, {pipeline_mode = #tpu.pipeline_mode<synchronous>, transform_indices = @transform_3, window_bounds = array<i64: 3, 32, 32>}, {pipeline_mode = #tpu.pipeline_mode<synchronous>, transform_indices = @transform_4, window_bounds = array<i64: 3, 1, 32>}, {pipeline_mode = #tpu.pipeline_mode<synchronous>, transform_indices = @transform_5, window_bounds = array<i64: 3, 32, 32>}, {pipeline_mode = #tpu.pipeline_mode<synchronous>, transform_indices = @transform_6, window_bounds = array<i64: 3, 1, 32>}, {pipeline_mode = #tpu.pipeline_mode<synchronous>, transform_indices = @transform_7, window_bounds = array<i64: 32, 128>}, {pipeline_mode = #tpu.pipeline_mode<synchronous>, transform_indices = @transform_8, window_bounds = array<i64: 1, 128>}, {pipeline_mode = #tpu.pipeline_mode<synchronous>, transform_indices = @transform_9, window_bounds = array<i64: 8, 128>}, {transform_indices = @transform_10, window_bounds = array<i64: 1, 8, 128>}, {pipeline_mode = #tpu.pipeline_mode<synchronous>, transform_indices = @transform_11, window_bounds = array<i64: 8, 32>}, {transform_indices = @transform_12, window_bounds = array<i64: 1, 8, 128>}, {transform_indices = @transform_13, window_bounds = array<i64: 1, 8, 1>}]} {
    %0 = tpu.iota {dimensions = array<i32: 1>} : vector<8x128xi32>
    %c0_i32 = arith.constant 0 : i32
    %1 = arith.cmpi eq, %arg0, %c0_i32 : i32
    %2 = arith.extui %1 : i1 to i32
    %c0_i32_0 = arith.constant 0 : i32
    %3 = arith.cmpi ne, %2, %c0_i32_0 : i32
    scf.if %3 {
      %c0_75 = arith.constant 0 : index
      %c0_76 = arith.constant 0 : index
      %104 = vector.load %arg13[%c0_75, %c0_76] : memref<8x32xf32, #tpu.memory_space<vmem>>, vector<8x32xf32>
      %c0_77 = arith.constant 0 : index
      %c0_78 = arith.constant 0 : index
      %105 = vector.load %arg16[%c0_77, %c0_78] : memref<8x32xf32, #tpu.memory_space<vmem>>, vector<8x32xf32>
      tpu.vector_store %arg16[%c0_77, %c0_78], %104 {strides = array<i32>} : memref<8x32xf32, #tpu.memory_space<vmem>>, vector<8x32xf32>,
      %c0_79 = arith.constant 0 : index
      %106 = memref.load %arg1[%c0_79] : memref<1xi32, #tpu.memory_space<smem>>
      %107 = vector.broadcast %106 : i32 to vector<8x128xi32>
      %108 = arith.cmpi eq, %0, %107 : vector<8x128xi32>
      %109 = arith.extui %108 : vector<8x128xi1> to vector<8x128xi32>
      %110 = arith.sitofp %109 : vector<8x128xi32> to vector<8x128xf32>
      %c0_80 = arith.constant 0 : index
      %c0_81 = arith.constant 0 : index
      %111 = vector.load %arg17[%c0_80, %c0_81] : memref<8x128xf32, #tpu.memory_space<vmem>>, vector<8x128xf32>
      tpu.vector_store %arg17[%c0_80, %c0_81], %110 {strides = array<i32>} : memref<8x128xf32, #tpu.memory_space<vmem>>, vector<8x128xf32>,
      %c0_82 = arith.constant 0 : index
      %c0_83 = arith.constant 0 : index
      %112 = vector.load %arg3[%c0_82, %c0_83] : memref<8x32xf32, #tpu.memory_space<vmem>>, vector<8x32xf32>
      %c0_84 = arith.constant 0 : index
      %c0_85 = arith.constant 0 : index
      %c0_86 = arith.constant 0 : index
      %113 = vector.load %arg5[%c0_84, %c0_85, %c0_86] : memref<3x32x32xf32, #tpu.memory_space<vmem>>, vector<1x32x32xf32>
      %114 = vector.shape_cast %113 : vector<1x32x32xf32> to vector<32x32xf32>
      %cst_87 = arith.constant dense<0.000000e+00> : vector<8x32xf32>
      %115 = tpu.matmul %112, %114, %cst_87 {dimension_numbers = #tpu.dot_dimension_numbers<[1], [0], [0], [1], [0, 0, 1, 1], [], []>} : vector<8x32xf32>, vector<32x32xf32>, vector<8x32xf32> -> vector<8x32xf32>
      %c0_88 = arith.constant 0 : index
      %c0_89 = arith.constant 0 : index
      %c0_90 = arith.constant 0 : index
      %116 = vector.load %arg6[%c0_88, %c0_89, %c0_90] : memref<3x1x32xf32, #tpu.memory_space<vmem>>, vector<1x1x32xf32>
      %117 = vector.shape_cast %116 : vector<1x1x32xf32> to vector<1x32xf32>
      %118 = vector.broadcast %117 : vector<1x32xf32> to vector<8x32xf32>
      %119 = arith.addf %115, %118 : vector<8x32xf32>
      %c0_91 = arith.constant 0 : index
      %c0_92 = arith.constant 0 : index
      %c0_93 = arith.constant 0 : index
      %120 = vector.load %arg18[%c0_91, %c0_92, %c0_93] : memref<3x8x32xf32, #tpu.memory_space<vmem>>, vector<1x8x32xf32>
      %121 = vector.shape_cast %120 : vector<1x8x32xf32> to vector<8x32xf32>
      %122 = vector.shape_cast %119 : vector<8x32xf32> to vector<1x8x32xf32>
      tpu.vector_store %arg18[%c0_91, %c0_92, %c0_93], %122 {strides = array<i32>} : memref<3x8x32xf32, #tpu.memory_space<vmem>>, vector<1x8x32xf32>,
      %c1_94 = arith.constant 1 : index
      %c0_95 = arith.constant 0 : index
      %c0_96 = arith.constant 0 : index
      %123 = vector.load %arg5[%c1_94, %c0_95, %c0_96] : memref<3x32x32xf32, #tpu.memory_space<vmem>>, vector<1x32x32xf32>
      %124 = vector.shape_cast %123 : vector<1x32x32xf32> to vector<32x32xf32>
      %cst_97 = arith.constant dense<0.000000e+00> : vector<8x32xf32>
      %125 = tpu.matmul %112, %124, %cst_97 {dimension_numbers = #tpu.dot_dimension_numbers<[1], [0], [0], [1], [0, 0, 1, 1], [], []>} : vector<8x32xf32>, vector<32x32xf32>, vector<8x32xf32> -> vector<8x32xf32>
      %c1_98 = arith.constant 1 : index
      %c0_99 = arith.constant 0 : index
      %c0_100 = arith.constant 0 : index
      %126 = vector.load %arg6[%c1_98, %c0_99, %c0_100] : memref<3x1x32xf32, #tpu.memory_space<vmem>>, vector<1x1x32xf32>
      %127 = vector.shape_cast %126 : vector<1x1x32xf32> to vector<1x32xf32>
      %128 = vector.broadcast %127 : vector<1x32xf32> to vector<8x32xf32>
      %129 = arith.addf %125, %128 : vector<8x32xf32>
      %c1_101 = arith.constant 1 : index
      %c0_102 = arith.constant 0 : index
      %c0_103 = arith.constant 0 : index
      %130 = vector.load %arg18[%c1_101, %c0_102, %c0_103] : memref<3x8x32xf32, #tpu.memory_space<vmem>>, vector<1x8x32xf32>
      %131 = vector.shape_cast %130 : vector<1x8x32xf32> to vector<8x32xf32>
      %132 = vector.shape_cast %129 : vector<8x32xf32> to vector<1x8x32xf32>
      tpu.vector_store %arg18[%c1_101, %c0_102, %c0_103], %132 {strides = array<i32>} : memref<3x8x32xf32, #tpu.memory_space<vmem>>, vector<1x8x32xf32>,
      %c2_104 = arith.constant 2 : index
      %c0_105 = arith.constant 0 : index
      %c0_106 = arith.constant 0 : index
      %133 = vector.load %arg5[%c2_104, %c0_105, %c0_106] : memref<3x32x32xf32, #tpu.memory_space<vmem>>, vector<1x32x32xf32>
      %134 = vector.shape_cast %133 : vector<1x32x32xf32> to vector<32x32xf32>
      %cst_107 = arith.constant dense<0.000000e+00> : vector<8x32xf32>
      %135 = tpu.matmul %112, %134, %cst_107 {dimension_numbers = #tpu.dot_dimension_numbers<[1], [0], [0], [1], [0, 0, 1, 1], [], []>} : vector<8x32xf32>, vector<32x32xf32>, vector<8x32xf32> -> vector<8x32xf32>
      %c2_108 = arith.constant 2 : index
      %c0_109 = arith.constant 0 : index
      %c0_110 = arith.constant 0 : index
      %136 = vector.load %arg6[%c2_108, %c0_109, %c0_110] : memref<3x1x32xf32, #tpu.memory_space<vmem>>, vector<1x1x32xf32>
      %137 = vector.shape_cast %136 : vector<1x1x32xf32> to vector<1x32xf32>
      %138 = vector.broadcast %137 : vector<1x32xf32> to vector<8x32xf32>
      %139 = arith.addf %135, %138 : vector<8x32xf32>
      %c2_111 = arith.constant 2 : index
      %c0_112 = arith.constant 0 : index
      %c0_113 = arith.constant 0 : index
      %140 = vector.load %arg18[%c2_111, %c0_112, %c0_113] : memref<3x8x32xf32, #tpu.memory_space<vmem>>, vector<1x8x32xf32>
      %141 = vector.shape_cast %140 : vector<1x8x32xf32> to vector<8x32xf32>
      %142 = vector.shape_cast %139 : vector<8x32xf32> to vector<1x8x32xf32>
      tpu.vector_store %arg18[%c2_111, %c0_112, %c0_113], %142 {strides = array<i32>} : memref<3x8x32xf32, #tpu.memory_space<vmem>>, vector<1x8x32xf32>,
    } else {
    }
    %c0 = arith.constant 0 : index
    %c0_1 = arith.constant 0 : index
    %4 = vector.load %arg16[%c0, %c0_1] : memref<8x32xf32, #tpu.memory_space<vmem>>, vector<8x32xf32>
    %c0_2 = arith.constant 0 : index
    %c0_3 = arith.constant 0 : index
    %5 = vector.load %arg17[%c0_2, %c0_3] : memref<8x128xf32, #tpu.memory_space<vmem>>, vector<8x128xf32>
    %c0_4 = arith.constant 0 : index
    %c0_5 = arith.constant 0 : index
    %c0_6 = arith.constant 0 : index
    %6 = vector.load %arg18[%c0_4, %c0_5, %c0_6] : memref<3x8x32xf32, #tpu.memory_space<vmem>>, vector<1x8x32xf32>
    %7 = vector.shape_cast %6 : vector<1x8x32xf32> to vector<8x32xf32>
    %c1 = arith.constant 1 : index
    %c0_7 = arith.constant 0 : index
    %c0_8 = arith.constant 0 : index
    %8 = vector.load %arg18[%c1, %c0_7, %c0_8] : memref<3x8x32xf32, #tpu.memory_space<vmem>>, vector<1x8x32xf32>
    %9 = vector.shape_cast %8 : vector<1x8x32xf32> to vector<8x32xf32>
    %c2 = arith.constant 2 : index
    %c0_9 = arith.constant 0 : index
    %c0_10 = arith.constant 0 : index
    %10 = vector.load %arg18[%c2, %c0_9, %c0_10] : memref<3x8x32xf32, #tpu.memory_space<vmem>>, vector<1x8x32xf32>
    %11 = vector.shape_cast %10 : vector<1x8x32xf32> to vector<8x32xf32>
    %c0_11 = arith.constant 0 : index
    %c0_12 = arith.constant 0 : index
    %12 = vector.load %arg2[%c0_11, %c0_12] : memref<128x32xf32, #tpu.memory_space<vmem>>, vector<128x32xf32>
    %cst = arith.constant dense<0.000000e+00> : vector<8x32xf32>
    %13 = tpu.matmul %5, %12, %cst {dimension_numbers = #tpu.dot_dimension_numbers<[1], [0], [0], [1], [0, 0, 1, 1], [], []>} : vector<8x128xf32>, vector<128x32xf32>, vector<8x32xf32> -> vector<8x32xf32>
    %cst_13 = arith.constant 0.000000e+00 : f32
    %14 = vector.broadcast %cst_13 : f32 to vector<8x32xf32>
    %15 = arith.maximumf %13, %14 : vector<8x32xf32>
    %c0_14 = arith.constant 0 : index
    %c0_15 = arith.constant 0 : index
    %c0_16 = arith.constant 0 : index
    %16 = vector.load %arg4[%c0_14, %c0_15, %c0_16] : memref<3x32x32xf32, #tpu.memory_space<vmem>>, vector<1x32x32xf32>
    %17 = vector.shape_cast %16 : vector<1x32x32xf32> to vector<32x32xf32>
    %cst_17 = arith.constant dense<0.000000e+00> : vector<8x32xf32>
    %18 = tpu.matmul %15, %17, %cst_17 {dimension_numbers = #tpu.dot_dimension_numbers<[1], [0], [0], [1], [0, 0, 1, 1], [], []>} : vector<8x32xf32>, vector<32x32xf32>, vector<8x32xf32> -> vector<8x32xf32>
    %19 = arith.addf %18, %7 : vector<8x32xf32>
    %c1_18 = arith.constant 1 : index
    %c0_19 = arith.constant 0 : index
    %c0_20 = arith.constant 0 : index
    %20 = vector.load %arg4[%c1_18, %c0_19, %c0_20] : memref<3x32x32xf32, #tpu.memory_space<vmem>>, vector<1x32x32xf32>
    %21 = vector.shape_cast %20 : vector<1x32x32xf32> to vector<32x32xf32>
    %cst_21 = arith.constant dense<0.000000e+00> : vector<8x32xf32>
    %22 = tpu.matmul %15, %21, %cst_21 {dimension_numbers = #tpu.dot_dimension_numbers<[1], [0], [0], [1], [0, 0, 1, 1], [], []>} : vector<8x32xf32>, vector<32x32xf32>, vector<8x32xf32> -> vector<8x32xf32>
    %23 = arith.addf %22, %9 : vector<8x32xf32>
    %c2_22 = arith.constant 2 : index
    %c0_23 = arith.constant 0 : index
    %c0_24 = arith.constant 0 : index
    %24 = vector.load %arg4[%c2_22, %c0_23, %c0_24] : memref<3x32x32xf32, #tpu.memory_space<vmem>>, vector<1x32x32xf32>
    %25 = vector.shape_cast %24 : vector<1x32x32xf32> to vector<32x32xf32>
    %cst_25 = arith.constant dense<0.000000e+00> : vector<8x32xf32>
    %26 = tpu.matmul %15, %25, %cst_25 {dimension_numbers = #tpu.dot_dimension_numbers<[1], [0], [0], [1], [0, 0, 1, 1], [], []>} : vector<8x32xf32>, vector<32x32xf32>, vector<8x32xf32> -> vector<8x32xf32>
    %27 = arith.addf %26, %11 : vector<8x32xf32>
    %c0_26 = arith.constant 0 : index
    %c0_27 = arith.constant 0 : index
    %c0_28 = arith.constant 0 : index
    %28 = vector.load %arg7[%c0_26, %c0_27, %c0_28] : memref<3x32x32xf32, #tpu.memory_space<vmem>>, vector<1x32x32xf32>
    %29 = vector.shape_cast %28 : vector<1x32x32xf32> to vector<32x32xf32>
    %cst_29 = arith.constant dense<0.000000e+00> : vector<8x32xf32>
    %30 = tpu.matmul %4, %29, %cst_29 {dimension_numbers = #tpu.dot_dimension_numbers<[1], [0], [0], [1], [0, 0, 1, 1], [], []>} : vector<8x32xf32>, vector<32x32xf32>, vector<8x32xf32> -> vector<8x32xf32>
    %c0_30 = arith.constant 0 : index
    %c0_31 = arith.constant 0 : index
    %c0_32 = arith.constant 0 : index
    %31 = vector.load %arg8[%c0_30, %c0_31, %c0_32] : memref<3x1x32xf32, #tpu.memory_space<vmem>>, vector<1x1x32xf32>
    %32 = vector.shape_cast %31 : vector<1x1x32xf32> to vector<1x32xf32>
    %33 = vector.broadcast %32 : vector<1x32xf32> to vector<8x32xf32>
    %34 = arith.addf %30, %33 : vector<8x32xf32>
    %c1_33 = arith.constant 1 : index
    %c0_34 = arith.constant 0 : index
    %c0_35 = arith.constant 0 : index
    %35 = vector.load %arg7[%c1_33, %c0_34, %c0_35] : memref<3x32x32xf32, #tpu.memory_space<vmem>>, vector<1x32x32xf32>
    %36 = vector.shape_cast %35 : vector<1x32x32xf32> to vector<32x32xf32>
    %cst_36 = arith.constant dense<0.000000e+00> : vector<8x32xf32>
    %37 = tpu.matmul %4, %36, %cst_36 {dimension_numbers = #tpu.dot_dimension_numbers<[1], [0], [0], [1], [0, 0, 1, 1], [], []>} : vector<8x32xf32>, vector<32x32xf32>, vector<8x32xf32> -> vector<8x32xf32>
    %c1_37 = arith.constant 1 : index
    %c0_38 = arith.constant 0 : index
    %c0_39 = arith.constant 0 : index
    %38 = vector.load %arg8[%c1_37, %c0_38, %c0_39] : memref<3x1x32xf32, #tpu.memory_space<vmem>>, vector<1x1x32xf32>
    %39 = vector.shape_cast %38 : vector<1x1x32xf32> to vector<1x32xf32>
    %40 = vector.broadcast %39 : vector<1x32xf32> to vector<8x32xf32>
    %41 = arith.addf %37, %40 : vector<8x32xf32>
    %c2_40 = arith.constant 2 : index
    %c0_41 = arith.constant 0 : index
    %c0_42 = arith.constant 0 : index
    %42 = vector.load %arg7[%c2_40, %c0_41, %c0_42] : memref<3x32x32xf32, #tpu.memory_space<vmem>>, vector<1x32x32xf32>
    %43 = vector.shape_cast %42 : vector<1x32x32xf32> to vector<32x32xf32>
    %cst_43 = arith.constant dense<0.000000e+00> : vector<8x32xf32>
    %44 = tpu.matmul %4, %43, %cst_43 {dimension_numbers = #tpu.dot_dimension_numbers<[1], [0], [0], [1], [0, 0, 1, 1], [], []>} : vector<8x32xf32>, vector<32x32xf32>, vector<8x32xf32> -> vector<8x32xf32>
    %c2_44 = arith.constant 2 : index
    %c0_45 = arith.constant 0 : index
    %c0_46 = arith.constant 0 : index
    %45 = vector.load %arg8[%c2_44, %c0_45, %c0_46] : memref<3x1x32xf32, #tpu.memory_space<vmem>>, vector<1x1x32xf32>
    %46 = vector.shape_cast %45 : vector<1x1x32xf32> to vector<1x32xf32>
    %47 = vector.broadcast %46 : vector<1x32xf32> to vector<8x32xf32>
    %48 = arith.addf %44, %47 : vector<8x32xf32>
    %49 = arith.addf %19, %34 : vector<8x32xf32>
    %50 = arith.negf %49 : vector<8x32xf32>
    %51 = math.exp %50 : vector<8x32xf32>
    %cst_47 = arith.constant 1.000000e+00 : f32
    %52 = vector.broadcast %cst_47 : f32 to vector<8x32xf32>
    %53 = arith.addf %52, %51 : vector<8x32xf32>
    %54 = arith.divf %52, %53 : vector<8x32xf32>
    %55 = arith.addf %23, %41 : vector<8x32xf32>
    %56 = arith.negf %55 : vector<8x32xf32>
    %57 = math.exp %56 : vector<8x32xf32>
    %cst_48 = arith.constant 1.000000e+00 : f32
    %58 = vector.broadcast %cst_48 : f32 to vector<8x32xf32>
    %59 = arith.addf %58, %57 : vector<8x32xf32>
    %60 = arith.divf %58, %59 : vector<8x32xf32>
    %61 = arith.mulf %54, %48 : vector<8x32xf32>
    %62 = arith.addf %27, %61 : vector<8x32xf32>
    %63 = math.tanh %62 : vector<8x32xf32>
    %cst_49 = arith.constant 1.000000e+00 : f32
    %64 = vector.broadcast %cst_49 : f32 to vector<8x32xf32>
    %65 = arith.subf %64, %60 : vector<8x32xf32>
    %66 = arith.mulf %65, %63 : vector<8x32xf32>
    %67 = arith.mulf %60, %4 : vector<8x32xf32>
    %68 = arith.addf %66, %67 : vector<8x32xf32>
    %c0_50 = arith.constant 0 : index
    %c0_51 = arith.constant 0 : index
    %69 = vector.load %arg9[%c0_50, %c0_51] : memref<32x128xf32, #tpu.memory_space<vmem>>, vector<32x128xf32>
    %cst_52 = arith.constant dense<0.000000e+00> : vector<8x128xf32>
    %70 = tpu.matmul %68, %69, %cst_52 {dimension_numbers = #tpu.dot_dimension_numbers<[1], [0], [0], [1], [0, 0, 1, 1], [], []>} : vector<8x32xf32>, vector<32x128xf32>, vector<8x128xf32> -> vector<8x128xf32>
    %c0_53 = arith.constant 0 : index
    %c0_54 = arith.constant 0 : index
    %71 = vector.load %arg10[%c0_53, %c0_54] : memref<1x128xf32, #tpu.memory_space<vmem>>, vector<1x128xf32>
    %72 = vector.broadcast %71 : vector<1x128xf32> to vector<8x128xf32>
    %73 = arith.addf %70, %72 : vector<8x128xf32>
    %c0_55 = arith.constant 0 : index
    %c0_56 = arith.constant 0 : index
    %c0_57 = arith.constant 0 : index
    %74 = vector.load %arg14[%c0_55, %c0_56, %c0_57] : memref<1x8x128xf32, #tpu.memory_space<vmem>>, vector<1x8x128xf32>
    %75 = vector.shape_cast %74 : vector<1x8x128xf32> to vector<8x128xf32>
    %76 = vector.shape_cast %73 : vector<8x128xf32> to vector<1x8x128xf32>
    tpu.vector_store %arg14[%c0_55, %c0_56, %c0_57], %76 {strides = array<i32>} : memref<1x8x128xf32, #tpu.memory_space<vmem>>, vector<1x8x128xf32>,
    %c0_58 = arith.constant 0 : index
    %c0_59 = arith.constant 0 : index
    %77 = vector.load %arg11[%c0_58, %c0_59] : memref<8x128xf32, #tpu.memory_space<vmem>>, vector<8x128xf32>
    %cst_60 = arith.constant 0.000000e+00 : f32
    %78 = vector.broadcast %cst_60 : f32 to vector<8x128xf32>
    %79 = arith.cmpf ogt, %77, %78 : vector<8x128xf32>
    %cst_61 = arith.constant -1.000000e+30 : f32
    %80 = vector.broadcast %cst_61 : f32 to vector<8x128xf32>
    %81 = arith.select %79, %73, %80 : vector<8x128xi1>, vector<8x128xf32>
    %c0_62 = arith.constant 0 : index
    %c0_63 = arith.constant 0 : index
    %c0_64 = arith.constant 0 : index
    %82 = vector.load %arg12[%c0_62, %c0_63, %c0_64] : memref<1x8x128xf32, #tpu.memory_space<vmem>>, vector<1x8x128xf32>
    %83 = vector.shape_cast %82 : vector<1x8x128xf32> to vector<8x128xf32>
    %84 = arith.addf %81, %83 : vector<8x128xf32>
    %cst_65 = arith.constant dense<0xFF800000> : vector<8xf32>
    %85 = vector.multi_reduction <maximumf>, %84, %cst_65 [1] : vector<8x128xf32> to vector<8xf32>
    %86 = vector.shape_cast %85 : vector<8xf32> to vector<8x1xf32>
    %87 = arith.sitofp %0 : vector<8x128xi32> to vector<8x128xf32>
    %88 = vector.broadcast %86 : vector<8x1xf32> to vector<8x128xf32>
    %89 = arith.cmpf oge, %84, %88 : vector<8x128xf32>
    %cst_66 = arith.constant 1.280000e+02 : f32
    %90 = vector.broadcast %cst_66 : f32 to vector<8x128xf32>
    %91 = arith.select %89, %87, %90 : vector<8x128xi1>, vector<8x128xf32>
    %cst_67 = arith.constant dense<0x7F800000> : vector<8xf32>
    %92 = vector.multi_reduction <minimumf>, %91, %cst_67 [1] : vector<8x128xf32> to vector<8xf32>
    %93 = vector.shape_cast %92 : vector<8xf32> to vector<8x1xf32>
    %94 = arith.fptosi %93 : vector<8x1xf32> to vector<8x1xi32>
    %c0_68 = arith.constant 0 : index
    %c0_69 = arith.constant 0 : index
    %c0_70 = arith.constant 0 : index
    %95 = vector.load %arg15[%c0_68, %c0_69, %c0_70] : memref<1x8x1xi32, #tpu.memory_space<vmem>>, vector<1x8x1xi32>
    %96 = vector.shape_cast %95 : vector<1x8x1xi32> to vector<8x1xi32>
    %97 = vector.shape_cast %94 : vector<8x1xi32> to vector<1x8x1xi32>
    tpu.vector_store %arg15[%c0_68, %c0_69, %c0_70], %97 {strides = array<i32>} : memref<1x8x1xi32, #tpu.memory_space<vmem>>, vector<1x8x1xi32>,
    %98 = vector.broadcast %94 : vector<8x1xi32> to vector<8x128xi32>
    %99 = arith.cmpi eq, %0, %98 : vector<8x128xi32>
    %100 = arith.extui %99 : vector<8x128xi1> to vector<8x128xi32>
    %101 = arith.sitofp %100 : vector<8x128xi32> to vector<8x128xf32>
    %c0_71 = arith.constant 0 : index
    %c0_72 = arith.constant 0 : index
    %102 = vector.load %arg17[%c0_71, %c0_72] : memref<8x128xf32, #tpu.memory_space<vmem>>, vector<8x128xf32>
    tpu.vector_store %arg17[%c0_71, %c0_72], %101 {strides = array<i32>} : memref<8x128xf32, #tpu.memory_space<vmem>>, vector<8x128xf32>,
    %c0_73 = arith.constant 0 : index
    %c0_74 = arith.constant 0 : index
    %103 = vector.load %arg16[%c0_73, %c0_74] : memref<8x32xf32, #tpu.memory_space<vmem>>, vector<8x32xf32>
    tpu.vector_store %arg16[%c0_73, %c0_74], %68 {strides = array<i32>} : memref<8x32xf32, #tpu.memory_space<vmem>>, vector<8x32xf32>,
    return
  }
  func.func @transform_0(%arg0: i32, %arg1: memref<1xi32, #tpu.memory_space<smem>>) -> (i32, i32) {
    %c0_i32 = arith.constant 0 : i32
    %c0_i32_0 = arith.constant 0 : i32
    %c0_i32_1 = arith.constant 0 : i32
    return %c0_i32, %c0_i32_0 : i32, i32
  }
  func.func @transform_1(%arg0: i32, %arg1: memref<1xi32, #tpu.memory_space<smem>>) -> (i32, i32) {
    %c0_i32 = arith.constant 0 : i32
    %c0_i32_0 = arith.constant 0 : i32
    %c0_i32_1 = arith.constant 0 : i32
    return %c0_i32, %c0_i32_0 : i32, i32
  }
  func.func @transform_2(%arg0: i32, %arg1: memref<1xi32, #tpu.memory_space<smem>>) -> (i32, i32, i32) {
    %c0_i32 = arith.constant 0 : i32
    %c0_i32_0 = arith.constant 0 : i32
    %c0_i32_1 = arith.constant 0 : i32
    %c0_i32_2 = arith.constant 0 : i32
    return %c0_i32, %c0_i32_0, %c0_i32_1 : i32, i32, i32
  }
  func.func @transform_3(%arg0: i32, %arg1: memref<1xi32, #tpu.memory_space<smem>>) -> (i32, i32, i32) {
    %c0_i32 = arith.constant 0 : i32
    %c0_i32_0 = arith.constant 0 : i32
    %c0_i32_1 = arith.constant 0 : i32
    %c0_i32_2 = arith.constant 0 : i32
    return %c0_i32, %c0_i32_0, %c0_i32_1 : i32, i32, i32
  }
  func.func @transform_4(%arg0: i32, %arg1: memref<1xi32, #tpu.memory_space<smem>>) -> (i32, i32, i32) {
    %c0_i32 = arith.constant 0 : i32
    %c0_i32_0 = arith.constant 0 : i32
    %c0_i32_1 = arith.constant 0 : i32
    %c0_i32_2 = arith.constant 0 : i32
    return %c0_i32, %c0_i32_0, %c0_i32_1 : i32, i32, i32
  }
  func.func @transform_5(%arg0: i32, %arg1: memref<1xi32, #tpu.memory_space<smem>>) -> (i32, i32, i32) {
    %c0_i32 = arith.constant 0 : i32
    %c0_i32_0 = arith.constant 0 : i32
    %c0_i32_1 = arith.constant 0 : i32
    %c0_i32_2 = arith.constant 0 : i32
    return %c0_i32, %c0_i32_0, %c0_i32_1 : i32, i32, i32
  }
  func.func @transform_6(%arg0: i32, %arg1: memref<1xi32, #tpu.memory_space<smem>>) -> (i32, i32, i32) {
    %c0_i32 = arith.constant 0 : i32
    %c0_i32_0 = arith.constant 0 : i32
    %c0_i32_1 = arith.constant 0 : i32
    %c0_i32_2 = arith.constant 0 : i32
    return %c0_i32, %c0_i32_0, %c0_i32_1 : i32, i32, i32
  }
  func.func @transform_7(%arg0: i32, %arg1: memref<1xi32, #tpu.memory_space<smem>>) -> (i32, i32) {
    %c0_i32 = arith.constant 0 : i32
    %c0_i32_0 = arith.constant 0 : i32
    %c0_i32_1 = arith.constant 0 : i32
    return %c0_i32, %c0_i32_0 : i32, i32
  }
  func.func @transform_8(%arg0: i32, %arg1: memref<1xi32, #tpu.memory_space<smem>>) -> (i32, i32) {
    %c0_i32 = arith.constant 0 : i32
    %c0_i32_0 = arith.constant 0 : i32
    %c0_i32_1 = arith.constant 0 : i32
    return %c0_i32, %c0_i32_0 : i32, i32
  }
  func.func @transform_9(%arg0: i32, %arg1: memref<1xi32, #tpu.memory_space<smem>>) -> (i32, i32) {
    %c0_i32 = arith.constant 0 : i32
    %c0_i32_0 = arith.constant 0 : i32
    %c0_i32_1 = arith.constant 0 : i32
    return %c0_i32, %c0_i32_0 : i32, i32
  }
  func.func @transform_10(%arg0: i32, %arg1: memref<1xi32, #tpu.memory_space<smem>>) -> (i32, i32, i32) {
    %c0_i32 = arith.constant 0 : i32
    %c0_i32_0 = arith.constant 0 : i32
    %c0_i32_1 = arith.constant 0 : i32
    return %arg0, %c0_i32, %c0_i32_0 : i32, i32, i32
  }
  func.func @transform_11(%arg0: i32, %arg1: memref<1xi32, #tpu.memory_space<smem>>) -> (i32, i32) {
    %c0_i32 = arith.constant 0 : i32
    %c0_i32_0 = arith.constant 0 : i32
    %c0_i32_1 = arith.constant 0 : i32
    return %c0_i32, %c0_i32_0 : i32, i32
  }
  func.func @transform_12(%arg0: i32, %arg1: memref<1xi32, #tpu.memory_space<smem>>) -> (i32, i32, i32) {
    %c0_i32 = arith.constant 0 : i32
    %c0_i32_0 = arith.constant 0 : i32
    %c0_i32_1 = arith.constant 0 : i32
    return %arg0, %c0_i32, %c0_i32_0 : i32, i32, i32
  }
  func.func @transform_13(%arg0: i32, %arg1: memref<1xi32, #tpu.memory_space<smem>>) -> (i32, i32, i32) {
    %c0_i32 = arith.constant 0 : i32
    %c0_i32_0 = arith.constant 0 : i32
    %c0_i32_1 = arith.constant 0 : i32
    return %arg0, %c0_i32, %c0_i32_0 : i32, i32, i32
  }
}

</mosaic_0001>

<bundles_post_ra>
// kernel: _fused_decode.1
= control target key start
LH: loop header
LB: loop body
LE: loop exit
PB: predicated region body
PF: predicated region fallthrough
CT: control target
= control target key end

     0   :  { %s1810_s0 = inlined_call_operand.<no memory space> [shape: s32[1], index: 0, kind: input, shape index: {}]   ;;  %s1811_s1 = inlined_call_operand.vmem [shape: f32[128,32], index: 1, kind: input, shape index: {}]   ;;  %s1812_s2 = inlined_call_operand.vmem [shape: f32[8,32], index: 2, kind: input, shape index: {}]   ;;  %s1813_s3 = inlined_call_operand.vmem [shape: f32[3,32,32], index: 3, kind: input, shape index: {}]   ;;  %s1814_s4 = inlined_call_operand.hbm [shape: f32[3,32,32], index: 4, kind: input, shape index: {}]   ;;  %s1815_s5 = inlined_call_operand.hbm [shape: f32[3,1,32], index: 5, kind: input, shape index: {}]   ;;  %s1816_s6 = inlined_call_operand.hbm [shape: f32[3,32,32], index: 6, kind: input, shape index: {}]   ;;  %s1817_s7 = inlined_call_operand.hbm [shape: f32[3,1,32], index: 7, kind: input, shape index: {}]   ;;  %s1818_s8 = inlined_call_operand.vmem [shape: f32[32,128], index: 8, kind: input, shape index: {}]   ;;  %s1819_s9 = inlined_call_operand.vmem [shape: f32[1,128], index: 9, kind: input, shape index: {}]   ;;  %s1820_s10 = inlined_call_operand.vmem [shape: f32[8,128], index: 10, kind: input, shape index: {}]   ;;  %s1821_s11 = inlined_call_operand.vmem [shape: f32[2,8,128], index: 11, kind: input, shape index: {}]   ;;  %s1822_s12 = inlined_call_operand.vmem [shape: f32[8,32], index: 12, kind: input, shape index: {}]   ;;  %s1823_s13 = inlined_call_operand.hbm [shape: f32[2,8,128], index: 13, kind: output, shape index: {0}]   ;;  %s1824_s14 = inlined_call_operand.vmem [shape: s32[2,8,1], index: 14, kind: output, shape index: {1}]  }
   0x1   :  { %1834 = sst [smem:[#allocation27_spill]] %s1814_s4 }
   0x2   :  { %1835 = sst [smem:[#allocation28_spill]] %s1815_s5 }
   0x3   :  { %1836 = sst [smem:[#allocation29_spill]] %s1823_s13 }
   0x4   :  { %20 = sst [smem:[#allocation6]] %s1810_s0 }
   0x5   :  { %21 = vsyncpa [#allocation8], 0 }
   0x6   :  { %22 = vsyncpa [#allocation11], 0 }
   0x7   :  { %23 = vsyncpa [#allocation14], 0 }
   0x8   :  { %24 = vsyncpa [#allocation9], 0 }
   0x9   :  { %26 = vsyncpa [#allocation9 + $0x1], 0  ;;  %s1521_s15 = smov 0   ;;  %s1523_s16 = smov 0  }
   0xa   :  { %s1525_s17 = smov 0   ;;  %s1527_s18 = smov 0  }
   0xb LB: > { %1837 = sst [smem:[#allocation20_spill]] %s1419_s15  ;;  %s1542_s0 = sadd.s32 4294967295, %s1431_s18   ;;  %s1431_s18 = sphi %s1527_s18, %s1855_s18   ;;  %s1427_s17 = sphi %s1525_s17, %s1857_s17   ;;  %s1423_s16 = sphi %s1523_s16, %s1859_s16   ;;  %s1419_s15 = sphi %s1521_s15, %s1858_s15  }
   0xc   : > { %1838 = sst [smem:[#allocation21_spill]] %s1427_s17  ;;  %s1087_s19 = sadd.s32 4294967294, %s1431_s18  }
   0xd   : > { %1839 = sst [smem:[#allocation22_spill]] %s1431_s18  ;;  %s1546_s20 = sadd.s32 1, %s1431_s18  }
   0xe   : > { %1840 = sst [smem:[#allocation23_spill]] %s1546_s20  ;;  %s296_s21 = sadd.s32 1, %s1427_s17 }
   0xf   : > { %s293_s22 = ssub.s32 %s1431_s18, %s1546_s20  ;;  %p306_p0 = scmp.ne.s32.totalorder %s1427_s17, %s1423_s16 }
  0x10   : > { %p294_p1 = scmp.eq.s32.totalorder %s293_s22, 0  ;;  %p307_p2 = scmp.eq.s32.totalorder %s1542_s0, 1 }
  0x11   : > { %p312_p3 = scmp.ne.s32.totalorder %s1423_s16, %s1419_s15  ;;  %p313_p4 = scmp.eq.s32.totalorder %s1087_s19, 1 }
  0x12   : > { %s1557_s23 = scalar_select %p294_p1, %s1427_s17, %s296_s21  }
  0x13   : > { %p1559_p5 = por %p307_p2, %p306_p0  ;;  %p1563_p6 = por %p313_p4, %p312_p3 }
  0x14   : > { %1841 = sst [smem:[#allocation24_spill]] %s1557_s23  ;;  %p1088_p7 = scmp.ge.s32.totalorder %s1431_s18, 1 }
  0x15   : > { %s1842_s24 = scalar_select %p1559_p5, 1, 0 }
  0x16   : > { %s1844_s25 = scalar_select %p1563_p6, 1, 0 }
  0x17   : > { %1843 = sst [smem:[#allocation25_spill]] %s1842_s24  ;;  %p346_p8 = scmp.lt.s32.totalorder %s1431_s18, 3 }
  0x18   : > { %1845 = sst [smem:[#allocation26_spill]] %s1844_s25  ;;  %p1089_p9 = scmp.ne.s32.totalorder %s1542_s0, 0 }
  0x19   : > { %p1169_p10 = scmp.eq.s32.totalorder %s1542_s0, 0  ;;  %p1571_p11 = pnand %p1088_p7, %p346_p8 }
  0x1a   : > { %s1847_s5 = sld [smem:[#allocation28_spill]]  ;;  %s1433_s30 = smov [#allocation10]  }
  0x1b   : > { %p1152_p12 = pneg %p1571_p11  ;;  %s382_s19 = sshll.u32 %s1433_s30, 4  ;;  %s383_s19 = int_to_ptr.vmem [resolvable:$true] %s382_s19 }
  0x1c   : > { %s1849_s4 = sld [smem:[#allocation27_spill]]  ;;  %s1434_s27 = smov 16  }
  0x1d   : > { %p1582_p13 = pnand %p1169_p10, %p1152_p12  ;;  %s1435_s28 = smov 1  }
  0x1e   : > { %s1437_s20 = smov 128   ;;  %s1438_s25 = smov 8  }
  0x1f   : > { %s394_s23 = sshll.u32 %s1816_s6, 4  ;;  %s1439_s22 = smov [#allocation12]   ;;  %s395_s23 = int_to_ptr.hbm [resolvable:$true] %s394_s23 }
  0x20   : > { %s380_s29 = sshll.u32 %s1847_s5, 4  ;;  %s1436_s5 = smov [#allocation7]   ;;  %s381_s29 = int_to_ptr.hbm [resolvable:$true] %s380_s29 }
  0x21   : > { %1158 = dma.hbm_to_vmem [thread:$0]  (!%p1582_p13), %s381_s29, 48, %s383_s19, [#allocation11], %s1434_s27, %s1434_s27, %s1435_s28  }
  0x22   : > { %s366_s17 = sshll.u32 %s1849_s4, 4  ;;  %s368_s30 = sshll.u32 %s1436_s5, 4  ;;  %s367_s17 = int_to_ptr.hbm [resolvable:$true] %s366_s17  ;;  %s369_s30 = int_to_ptr.vmem [resolvable:$true] %s368_s30 }
  0x23   : > { %1155 = dma.hbm_to_vmem [thread:$0]  (!%p1582_p13), %s367_s17, 1536, %s369_s30, [#allocation8], %s1437_s20, %s1437_s20, %s1438_s25  }
  0x24   : > { %s396_s4 = sshll.u32 %s1439_s22, 4  ;;  %s408_s29 = sshll.u32 %s1817_s7, 4  ;;  %s397_s4 = int_to_ptr.vmem [resolvable:$true] %s396_s4  ;;  %s409_s29 = int_to_ptr.hbm [resolvable:$true] %s408_s29 }
  0x25   : > { %1161 = dma.hbm_to_vmem [thread:$0]  (!%p1582_p13), %s395_s23, 1536, %s397_s4, [#allocation11], %s1437_s20, %s1437_s20, %s1438_s25  }
  0x26   : > { %s1440_s5 = smov [#allocation13]   ;;  %445 = sbr.rel (%p1571_p11) target bundleno = 912 (0x390), region = 68 }
  0x27   : > { %s410_s19 = sshll.u32 %s1440_s5, 4  ;;  %s411_s19 = int_to_ptr.vmem [resolvable:$true] %s410_s19 }
  0x28   : > { %1164 = dma.hbm_to_vmem [thread:$0]  (!%p1582_p13), %s409_s29, 48, %s411_s19, [#allocation14], %s1434_s27, %s1434_s27, %s1435_s28  }
  0x2b   : > { %1402 = dma.done.wait (%p1169_p10), [#allocation8], 1536  }
  0x2c   : > { %1404 = vsyncadd (%p1169_p10), [#allocation8], 4294965760 }
  0x2d   : > { %1406 = dma.done.wait (%p1169_p10), [#allocation11], 1584  }
  0x2e   : > { %1408 = vsyncadd (%p1169_p10), [#allocation11], 4294965712 }
  0x2f   : > { %1410 = dma.done.wait (%p1169_p10), [#allocation14], 48  }
  0x30   : > { %1412 = vsyncadd (%p1169_p10), [#allocation14], 4294967248  ;;  %s499_s4 = sand.u32 1, %s1423_s16   ;;  %p508_p0 = scmp.lt.s32.totalorder %s1542_s0, 1  ;;  %v516_v0 = vlaneseq }
  0x31   : > { %s1621_s13 = sshll.u32 %s499_s4, 3  ;;  %521 = sbr.rel (%p1089_p9) target bundleno = 197 (0xc5), region = 88 }
  0x32   : > { %v1623_v1 = vand.u32 127, %v516_v0  ;;  %s509_s15 = scalar_select %p508_p0, %s1542_s0, 1 }
  0x33   : > { %s501_s27 = scalar_lea.vmem [#allocation15], %s1621_s13  ;;  %s525_s28 = sld [smem:[#allocation6]] (!%p1089_p9) }
  0x34   : > { %s1100_s17 = sshll.u32 %s509_s15, 3 }
  0x35   : > { %s1629_s24 = scalar_lea.vmem %s1821_s11, %s1100_s17  ;;  %s1634_s21 = scalar_lea.vmem %s1824_s14, %s1100_s17 }
  0x36   : > { %v600_v2 = vld [vmem:[#allocation7 + $0x58] sm:$0xff]  ;;  %v599_v3 = vld [vmem:[#allocation7 + $0x50] sm:$0xff]  ;;  %v598_v6 = vld [vmem:[#allocation7 + $0x48] sm:$0xff]  ;;  %vm523_vm0 = vcmask 261120   ;;  %v1441_v17 = vmov 0.0  }
  0x37   : > { %618 = vmatpush.msra.mxu2 %v600_v2  ;;  %v535_v4 = vld [vmem:[#allocation7 + $0x18] sm:$0xff]  ;;  %v534_v8 = vld [vmem:[#allocation7 + $0x10] sm:$0xff]  ;;  %v533_v10 = vld [vmem:[#allocation7 + $0x8] sm:$0xff] }
  0x38   : > { %v568_v5 = vld [vmem:[#allocation7 + $0x38] sm:$0xff]  ;;  %555 = vmatpush.msra.mxu0 %v535_v4  ;;  %v567_v9 = vld [vmem:[#allocation7 + $0x30] sm:$0xff]  ;;  %v566_v11 = vld [vmem:[#allocation7 + $0x28] sm:$0xff] }
  0x39   : > { %586 = vmatpush.msra.mxu1 %v568_v5  ;;  %v522_v7 = vld [vmem:[%s1822_s12] sm:$0xff]  ;;  %619 = vmatpush.msra.mxu2 %v599_v3  ;;  %v597_v12 = vld [vmem:[#allocation7 + $0x40] sm:$0xff]  ;;  %v526_v15 = vstv %s525_s28 }
  0x3a   : > { %524 = vst.msk [vmem:[#allocation2] sm:$0xff] %vm523_vm0, %v522_v7  ;;  %v531_v13 = vld [vmem:[%s1812_s2] sm:$0xff]  ;;  %556 = vmatpush.msra.mxu0 %v534_v8  ;;  %v532_v14 = vld [vmem:[#allocation7] sm:$0xff]  ;;  %vm527_vm1 = vcmp.eq.s32.totalorder %v1623_v1, %v526_v15 }
  0x3b   : > { %587 = vmatpush.msra.mxu1 %v567_v9  ;;  %620 = vmatpush.msra.mxu2 %v598_v6  ;;  %v565_v16 = vld [vmem:[#allocation7 + $0x20] sm:$0xff]  ;;  %v1103_v18 = vsel %vm527_vm1, 1.0, %v1441_v17 }
  0x3c   : > { %557 = vmatpush.msra.mxu0 %v533_v10  ;;  %530 = vst [vmem:[#allocation3] sm:$0xff] %v1103_v18  ;;  %v1220_v19 = vld [vmem:[#allocation10] ss:$0 sm:$0xff]  ;;  %v1221_v20 = vld [vmem:[#allocation10 + $0x1] ss:$0 sm:$0xff] }
  0x3d   : > { %588 = vmatpush.msra.mxu1 %v566_v11  ;;  %621 = vmatpush.msra.mxu2 %v597_v12  ;;  %v1222_v25 = vld [vmem:[#allocation10 + $0x2] ss:$0 sm:$0xff] }
  0x3e   : > { %1106 = vmatmul.msk.f32.vlgmr.msra.gmra.mxu2 %vm523_vm0, %v531_v13  ;;  %558 = vmatpush.msra.mxu0 %v532_v14 }
  0x3f   : > { %589 = vmatpush.msra.mxu1 %v565_v16  ;;  %1104 = vmatmul.msk.f32.vlgmr.msra.gmra.mxu0 %vm523_vm0, %v531_v13 }
  0x40   : > { %1105 = vmatmul.msk.f32.vlgmr.msra.gmra.mxu1 %vm523_vm0, %v531_v13 }
  0xbc   : > { %v560_v21 = vpop.f32.mrf.mxu0 }
  0xbd   : > { %v561_v22 = vadd.f32 %v1220_v19, %v560_v21  ;;  %v591_v23 = vpop.f32.mrf.mxu1 }
  0xbe   : > { %v592_v24 = vadd.f32 %v1221_v20, %v591_v23 }
  0xbf   : > { %563 = vst.msk [vmem:[#allocation4] sm:$0xff] %vm523_vm0, %v561_v22 }
  0xc0   : > { %595 = vst.msk [vmem:[#allocation4 + $0x8] sm:$0xff] %vm523_vm0, %v592_v24 }
  0xc1   : > { %v623_v26 = vpop.f32.mrf.mxu2 }
  0xc2   : > { %v624_v27 = vadd.f32 %v1222_v25, %v623_v26 }
  0xc4   : > { %627 = vst.msk [vmem:[#allocation4 + $0x10] sm:$0xff] %vm523_vm0, %v624_v27 }
  0xc5 PF: > { %v650_v28 = vld [vmem:[%s1811_s1 + $0x78] sm:$0xff]  ;;  %v649_v29 = vld [vmem:[%s1811_s1 + $0x70] sm:$0xff]  ;;  %v648_v30 = vld [vmem:[%s1811_s1 + $0x68] sm:$0xff]  ;;  %vm676_vm2 = vcmask 261120   ;;  %s1126_s18 = sshll.u32 %s1542_s0, 3  ;;  %s1851_s26 = sld [smem:[#allocation29_spill]] }
  0xc6   : > { %651 = vmatpush.msra.mxu0 %v650_v28  ;;  %v647_v31 = vld [vmem:[%s1811_s1 + $0x60] sm:$0xff]  ;;  %v646_v32 = vld [vmem:[%s1811_s1 + $0x58] sm:$0xff]  ;;  %v645_v34 = vld [vmem:[%s1811_s1 + $0x50] sm:$0xff]  ;;  %s957_s30 = sshll.u32 %s501_s27, 4  ;;  %s958_s30 = int_to_ptr.vmem [resolvable:$true] %s957_s30 }
  0xc7   : > { %v675_v33 = vld [vmem:[%s1813_s3 + $0x18] sm:$0xff]  ;;  %v674_v37 = vld [vmem:[%s1813_s3 + $0x10] sm:$0xff]  ;;  %v644_v40 = vld [vmem:[%s1811_s1 + $0x48] sm:$0xff] }
  0xc8   : > { %652 = vmatpush.msra.mxu0 %v649_v29  ;;  %692 = vmatpush.msra.mxu1 %v675_v33  ;;  %v1111_v35 = vld [vmem:[%s1813_s3 + $0x38] sm:$0xff]  ;;  %v1110_v38 = vld [vmem:[%s1813_s3 + $0x30] sm:$0xff]  ;;  %v643_v41 = vld [vmem:[%s1811_s1 + $0x40] sm:$0xff] }
  0xc9   : > { %v1116_v36 = vld [vmem:[%s1813_s3 + $0x58] sm:$0xff]  ;;  %717 = vmatpush.msra.mxu2 %v1111_v35  ;;  %v1115_v39 = vld [vmem:[%s1813_s3 + $0x50] sm:$0xff]  ;;  %v640_v44 = vld [vmem:[%s1811_s1 + $0x28] sm:$0xff] }
  0xca   : > { %653 = vmatpush.msra.mxu0 %v648_v30  ;;  %742 = vmatpush.msra.mxu3 %v1116_v36  ;;  %v642_v42 = vld [vmem:[%s1811_s1 + $0x38] sm:$0xff]  ;;  %v641_v43 = vld [vmem:[%s1811_s1 + $0x30] sm:$0xff]  ;;  %v639_v45 = vld [vmem:[%s1811_s1 + $0x20] sm:$0xff] }
  0xcb   : > { %693 = vmatpush.msra.mxu1 %v674_v37  ;;  %718 = vmatpush.msra.mxu2 %v1110_v38  ;;  %v638_v46 = vld [vmem:[%s1811_s1 + $0x18] sm:$0xff]  ;;  %v637_v47 = vld [vmem:[%s1811_s1 + $0x10] sm:$0xff]  ;;  %v636_v48 = vld [vmem:[%s1811_s1 + $0x8] sm:$0xff]  ;;  %s955_s28 = scalar_lea.hbm %s1851_s26, %s1126_s18  ;;  %s1377_s13 = scalar_lea.hbm %s1851_s26, 16 }
  0xcc   : > { %654 = vmatpush.msra.mxu0 %v647_v31  ;;  %743 = vmatpush.msra.mxu3 %v1115_v39  ;;  %v635_v49 = vld [vmem:[%s1811_s1] sm:$0xff]  ;;  %v629_v50 = vld [vmem:[#allocation3] sm:$0xff]  ;;  %v751_v61 = vld [vmem:[#allocation12 + $0x8] sm:$0xff]  ;;  %s959_s23 = sshll.u32 %s955_s28, 4  ;;  %s960_s23 = int_to_ptr.hbm [resolvable:$true] %s959_s23 }
  0xcd   : > { %v673_v51 = vld [vmem:[%s1813_s3 + $0x8] sm:$0xff]  ;;  %v672_v54 = vld [vmem:[%s1813_s3] sm:$0xff]  ;;  %v783_v62 = vld [vmem:[#allocation12 + $0x28] sm:$0xff]  ;;  %s1371_s22 = sshra.s32 %s960_s23, 4  ;;  %s1372_s22 = int_to_ptr.hbm [resolvable:$true] %s1371_s22 }
  0xce   : > { %655 = vmatpush.msra.mxu0 %v646_v32  ;;  %v1109_v52 = vld [vmem:[%s1813_s3 + $0x28] sm:$0xff]  ;;  %694 = vmatpush.msra.mxu1 %v673_v51  ;;  %v1108_v55 = vld [vmem:[%s1813_s3 + $0x20] sm:$0xff]  ;;  %v813_v4 = vld [vmem:[#allocation12 + $0x48] sm:$0xff]  ;;  %s1373_s29 = scalar_lea.hbm %s1372_s22, 8  ;;  %p1378_p4 = scmp.lt.s32.totalorder %s1372_s22, %s1851_s26 }
  0xcf   : > { %v1114_v53 = vld [vmem:[%s1813_s3 + $0x48] sm:$0xff]  ;;  %719 = vmatpush.msra.mxu2 %v1109_v52  ;;  %v1113_v56 = vld [vmem:[%s1813_s3 + $0x40] sm:$0xff]  ;;  %v630_v11 = vld [vmem:[#allocation4] sm:$0xff]  ;;  %p1374_p1 = scmp.ne.s32.totalorder %s1372_s22, %s1373_s29  ;;  %p1379_p7 = scmp.lt.s32.totalorder %s1377_s13, %s1373_s29 }
  0xd0   : > { %656 = vmatpush.msra.mxu0 %v645_v34  ;;  %744 = vmatpush.msra.mxu3 %v1114_v53  ;;  %v753_v57 = vld [vmem:[#allocation12 + $0x18] sm:$0xff]  ;;  %v752_v59 = vld [vmem:[#allocation12 + $0x10] sm:$0xff]  ;;  %v750_v63 = vld [vmem:[#allocation12] sm:$0xff] }
  0xd1   : > { %695 = vmatpush.msra.mxu1 %v672_v54  ;;  %720 = vmatpush.msra.mxu2 %v1108_v55  ;;  %v785_v58 = vld [vmem:[#allocation12 + $0x38] sm:$0xff]  ;;  %v784_v60 = vld [vmem:[#allocation12 + $0x30] sm:$0xff]  ;;  %v782_v0 = vld [vmem:[#allocation12 + $0x20] sm:$0xff]  ;;  %p1375_p2 = pnand %p1374_p1, %p1559_p5  ;;  %p1380_p8 = por %p1379_p7, %p1378_p4 }
  0xd2   : > { %657 = vmatpush.msra.mxu0 %v644_v40  ;;  %745 = vmatpush.msra.mxu3 %v1113_v56  ;;  %v815_v2 = vld [vmem:[#allocation12 + $0x58] sm:$0xff]  ;;  %v814_v3 = vld [vmem:[#allocation12 + $0x50] sm:$0xff]  ;;  %v812_v5 = vld [vmem:[#allocation12 + $0x40] sm:$0xff] }
  0xd3   : > { %773 = vmatpush.msrb.mxu1 %v753_v57  ;;  %803 = vmatpush.msrb.mxu2 %v785_v58  ;;  %v1740_v8 = vld [vmem:[#allocation2] sm:$0xff]  ;;  %v1223_v10 = vld [vmem:[#allocation13] ss:$0 sm:$0xff]  ;;  %v1224_v17 = vld [vmem:[#allocation13 + $0x1] ss:$0 sm:$0xff]  ;;  %p1376_p3 = pneg %p1375_p2 }
  0xd4   : > { %658 = vmatpush.msra.mxu0 %v643_v41  ;;  %833 = vmatpush.msrb.mxu3 %v815_v2  ;;  %v632_v18 = vld [vmem:[#allocation4 + $0x8] sm:$0xff]  ;;  %v890_v26 = vld [vmem:[%s1818_s8 + $0x10] sm:$0xff]  ;;  %v889_v27 = vld [vmem:[%s1818_s8 + $0x8] sm:$0xff] }
  0xd5   : > { %774 = vmatpush.msrb.mxu1 %v752_v59  ;;  %804 = vmatpush.msrb.mxu2 %v784_v60  ;;  %v891_v24 = vld [vmem:[%s1818_s8 + $0x18] sm:$0xff]  ;;  %v888_v29 = vld [vmem:[%s1818_s8] sm:$0xff]  ;;  %v1225_v36 = vld [vmem:[#allocation13 + $0x2] ss:$0 sm:$0xff]  ;;  %p1381_p9 = pnand %p1380_p8, %p1376_p3 }
  0xd6   : > { %659 = vmatpush.msra.mxu0 %v642_v42  ;;  %834 = vmatpush.msrb.mxu3 %v814_v3  ;;  %v1226_v3 = vld [vmem:[%s1819_s9] ss:$0 sm:$0xff] }
  0xd7   : > { %775 = vmatpush.msrb.mxu1 %v751_v61  ;;  %805 = vmatpush.msrb.mxu2 %v783_v62 }
  0xd8   : > { %660 = vmatpush.msra.mxu0 %v641_v43  ;;  %835 = vmatpush.msrb.mxu3 %v813_v4  ;;  %v634_v43 = vld [vmem:[#allocation4 + $0x10] sm:$0xff] }
  0xd9   : > { %776 = vmatpush.msrb.mxu1 %v750_v63  ;;  %806 = vmatpush.msrb.mxu2 %v782_v0  ;;  %v920_v4 = vld [vmem:[%s1820_s10] sm:$0xff] }
  0xda   : > { %661 = vmatpush.msra.mxu0 %v640_v44  ;;  %836 = vmatpush.msrb.mxu3 %v812_v5  ;;  %vm921_vm11 = vcmp.gt.f32.partialorder %v920_v4, 0.0 }
  0xdc   : > { %662 = vmatpush.msra.mxu0 %v639_v45 }
  0xde   : > { %663 = vmatpush.msra.mxu0 %v638_v46 }
  0xe0   : > { %664 = vmatpush.msra.mxu0 %v637_v47 }
  0xe2   : > { %665 = vmatpush.msra.mxu0 %v636_v48 }
  0xe4   : > { %666 = vmatpush.msra.mxu0 %v635_v49 }
  0xe5   : > { %667 = vmatmul.f32.vlgmr.msra.gmra.mxu0 %v629_v50 }
 0x162   : > { %v668_v6 = vpop.f32.mrf.mxu0 }
 0x163   : > { %v671_v7 = vmax.f32 %v668_v6, 0.0 }
 0x165   : > { %1107 = vmatmul.msk.f32.vlgmr.msra.gmra.mxu1 %vm676_vm2, %v671_v7  ;;  %1112 = vmatmul.msk.f32.vlgmr.msra.gmra.mxu2 %vm676_vm2, %v671_v7 }
 0x166   : > { %1117 = vmatmul.msk.f32.vlgmr.msra.gmra.mxu3 %vm676_vm2, %v671_v7  ;;  %911 = vmatpush.msra.mxu1 %v891_v24  ;;  %v923_v7 = vld [vmem:[%s1629_s24] sm:$0xff]  ;;  %s941_s24 = scalar_lea.sflag [#allocation9], %s499_s4 }
 0x168   : > { %912 = vmatpush.msra.mxu1 %v890_v26 }
 0x16a   : > { %913 = vmatpush.msra.mxu1 %v889_v27 }
 0x16c   : > { %914 = vmatpush.msra.mxu1 %v888_v29 }
 0x16d   : > { %1118 = vmatmul.msk.f32.vlgmr.msrb.gmra.mxu1 %vm676_vm2, %v1740_v8  ;;  %1119 = vmatmul.msk.f32.vlgmr.msrb.gmra.mxu2 %vm676_vm2, %v1740_v8 }
 0x16e   : > { %1120 = vmatmul.msk.f32.vlgmr.msrb.gmra.mxu3 %vm676_vm2, %v1740_v8 }
 0x1e2   : > { %v697_v9 = vpop.f32.mrf.mxu1 }
 0x1e3   : > { %v698_v14 = vadd.f32 %v697_v9, %v630_v11 }
 0x1e8   : > { %v722_v12 = vpop.f32.mrf.mxu2 }
 0x1e9   : > { %v723_v21 = vadd.f32 %v722_v12, %v632_v18  ;;  %v747_v31 = vpop.f32.mrf.mxu3 }
 0x1ea   : > { %v778_v13 = vpop.f32.mrf.mxu1  ;;  %v748_v50 = vadd.f32 %v747_v31, %v634_v43 }
 0x1eb   : > { %v779_v15 = vadd.f32 %v1223_v10, %v778_v13  ;;  %v927_v10 = vcvt.s32.f32 %v1623_v1 }
 0x1ed   : > { %v841_v16 = vadd.f32 %v779_v15, %v698_v14 }
 0x1ef   : > { %v1121_v19 = vmul.f32 -1.442695, %v841_v16 }
 0x1f0   : > { %v808_v20 = vpop.f32.mrf.mxu2 }
 0x1f1   : > { %1227 = vpow2.f32 %v1121_v19  ;;  %v809_v22 = vadd.f32 %v1224_v17, %v808_v20  ;;  %v838_v38 = vpop.f32.mrf.mxu3 }
 0x1f2   : > { %v839_v45 = vadd.f32 %v1225_v36, %v838_v38 }
 0x1f3   : > { %v861_v23 = vadd.f32 %v809_v22, %v723_v21 }
 0x1f5   : > { %v1122_v25 = vmul.f32 -1.442695, %v861_v23 }
 0x1f7   : > { %v1228_v28 = vpop.eup %1227  ;;  %1229 = vpow2.f32 %v1122_v25 }
 0x1f8   : > { %v845_v30 = vadd.f32 1.0, %v1228_v28 }
 0x1fa   : > { %1231 = vrcp.f32 %v845_v30  ;;  %v857_v39 = vand.u32 2147483648, %v845_v30  ;;  %v855_v41 = vand.u32 2147483647, %v845_v30  ;;  %vm851_vm4 = vweird.f32 %v845_v30 }
 0x1fc   : > { %v858_v47 = vor.u32 1.1754944e-38, %v857_v39  ;;  %vm856_vm6 = vcmp.eq.f32.partialorder %v855_v41, 8.507059e+37 }
 0x1fd   : > { %v1230_v32 = vpop.eup %1229 }
 0x1fe   : > { %v865_v33 = vadd.f32 1.0, %v1230_v32 }
 0x200   : > { %v1232_v34 = vpop.eup %1231  ;;  %1233 = vrcp.f32 %v865_v33  ;;  %v877_v53 = vand.u32 2147483648, %v865_v33  ;;  %v875_v55 = vand.u32 2147483647, %v865_v33  ;;  %vm871_vm8 = vweird.f32 %v865_v33 }
 0x201   : > { %v847_v35 = vmul.f32 %v1232_v34, %v845_v30  ;;  %vm852_vm3 = vweird.f32 %v1232_v34 }
 0x202   : > { %vm853_vm5 = vmor %vm851_vm4, %vm852_vm3  ;;  %v878_v58 = vor.u32 1.1754944e-38, %v877_v53  ;;  %vm876_vm10 = vcmp.eq.f32.partialorder %v875_v55, 8.507059e+37 }
 0x203   : > { %v848_v37 = vsub.f32 1.0, %v847_v35 }
 0x205   : > { %v849_v40 = vmul.f32 %v1232_v34, %v848_v37 }
 0x206   : > { %v1234_v42 = vpop.eup %1233 }
 0x207   : > { %v867_v44 = vmul.f32 %v1234_v42, %v865_v33  ;;  %v850_v46 = vadd.f32 %v1232_v34, %v849_v40  ;;  %vm872_vm7 = vweird.f32 %v1234_v42 }
 0x208   : > { %vm873_vm9 = vmor %vm871_vm8, %vm872_vm7 }
 0x209   : > { %v868_v48 = vsub.f32 1.0, %v867_v44  ;;  %v854_v49 = vsel %vm853_vm5, %v1232_v34, %v850_v46 }
 0x20a   : > { %v859_v51 = vsel %vm856_vm6, %v858_v47, %v854_v49 }
 0x20b   : > { %v869_v52 = vmul.f32 %v1234_v42, %v868_v48  ;;  %v881_v54 = vmul.f32 %v859_v51, %v839_v45 }
 0x20d   : > { %v870_v56 = vadd.f32 %v1234_v42, %v869_v52  ;;  %v882_v57 = vadd.f32 %v881_v54, %v748_v50 }
 0x20f   : > { %v874_v59 = vsel %vm873_vm9, %v1234_v42, %v870_v56  ;;  %1235 = vtanh.f32 %v882_v57 }
 0x210   : > { %v879_v60 = vsel %vm876_vm10, %v878_v58, %v874_v59 }
 0x211   : > { %v884_v61 = vsub.f32 1.0, %v879_v60  ;;  %v886_v0 = vmul.f32 %v879_v60, %v1740_v8 }
 0x215   : > { %v1236_v62 = vpop.eup %1235 }
 0x216   : > { %v885_v63 = vmul.f32 %v1236_v62, %v884_v61 }
 0x218   : > { %v887_v2 = vadd.f32 %v886_v0, %v885_v63 }
 0x21a   : > { %1123 = vmatmul.msk.f32.vlgmr.msra.gmra.mxu1 %vm676_vm2, %v887_v2  ;;  %939 = vst.msk [vmem:[#allocation2] sm:$0xff] %vm676_vm2, %v887_v2 }
 0x297   : > { %v916_v5 = vpop.f32.mrf.mxu1 }
 0x298   : > { %v917_v6 = vadd.f32 %v1226_v3, %v916_v5 }
 0x29a   : > { %919 = vst [vmem:[%s501_s27] sm:$0xff] %v917_v6  ;;  %v922_v8 = vsel %vm921_vm11, %v917_v6, -1e+30 }
 0x29b   : > { %v924_v9 = vadd.f32 %v923_v7, %v922_v8 }
 0x29d   : > { %925 = vmax.xlane.f32.xlu0 %v924_v9 }
 0x310   : > { %v926_v11 = vpop.xlane.xlu0 %925 }
 0x311   : > { %1384 = shalt.err (!%p1381_p9)
}
 0x312   : > { %1150 = dma.vmem_to_hbm [thread:$0]  (%p1559_p5), %s958_s30, 128, %s960_s23, %s941_s24   ;;  %vm928_vm12 = vcmp.ge.f32.partialorder %v924_v9, %v926_v11  ;;  %vm933_vm14 = vcmask 7168   ;;  %v1442_v18 = vmov 0.0  }
 0x313   : > { %v929_v12 = vsel %vm928_vm12, %v927_v10, 128.0 }
 0x314   : > { %930 = vmin.xlane.f32.xlu0 %v929_v12 }
 0x387   : > { %v931_v13 = vpop.xlane.xlu0 %930 }
 0x388   : > { %vm1129_vm13 = vcmp.lt.s32.totalorder %v931_v13, 0  ;;  %v1130_v14 = vceil.f32 %v931_v13  ;;  %v1131_v15 = vfloor.f32 %v931_v13 }
 0x38a   : > { %v1132_v16 = vsel %vm1129_vm13, %v1130_v14, %v1131_v15 }
 0x38b   : > { %v1133_v17 = vcvt.f32.s32 %v1132_v16 }
 0x38d   : > { %934 = vst.msk [vmem:[%s1634_s21] sm:$0xff] %vm933_vm14, %v1133_v17  ;;  %vm935_vm15 = vcmp.eq.s32.totalorder %v1623_v1, %v1133_v17 }
 0x38e   : > { %v1124_v19 = vsel %vm935_vm15, 1.0, %v1442_v18 }
 0x38f   : > { %938 = vst [vmem:[#allocation3] sm:$0xff] %v1124_v19 }
 0x390 PF: > { %s1852_s4 = sld [smem:[#allocation22_spill]] }
 0x391   : > { %s1853_s15 = sld [smem:[#allocation20_spill]] }
 0x396   : > { %p1177_p5 = scmp.ge.s32.totalorder %s1852_s4, 2 }
 0x397   : > { %s974_s18 = sand.u32 1, %s1853_s15  }
 0x398   : > { %p1166_p10 = pnand %p1177_p5, %p1563_p6  ;;  %s975_s20 = scalar_lea.sflag [#allocation9], %s974_s18 }
 0x39a   : > { %p1167_p11 = pneg %p1166_p10 }
 0x39c   : > { %1414 = dma.done.wait (%p1167_p11), %s975_s20, 128  }
 0x39d   : > { %1416 = vsyncadd (%p1167_p11), %s975_s20, 4294967168  ;;  %s1855_s18 = sld [smem:[#allocation23_spill]]  ;;  %s1858_s15 = smov %s1423_s16 }
 0x39e   : > { %s1856_s21 = sld [smem:[#allocation21_spill]] }
 0x39f   : > { %s1857_s17 = sld [smem:[#allocation24_spill]] }
 0x3a3   : > { %p29_p12 = scmp.ge.s32.totalorder %s1855_s18, 4  }
 0x3a4   : > { %s1859_s16 = smov %s1856_s21 }
 0x3a5   :  { %31 = sbr.rel (!%p29_p12) target bundleno = 11 (0xb), region = 150 }
 0x3aa   :  { %988 = vsyncpa [#allocation8], 1 }
 0x3ab   :  { %990 = vsyncpa [#allocation8 + $0x1], 1 }
 0x3ac   :  { %991 = vsyncpa [#allocation11], 1 }
 0x3ad   :  { %992 = vsyncpa [#allocation14], 1 }
 0x3ae   :  { %993 = vsyncpa [#allocation9], 1 }
 0x3af   :  { %995 = vsyncpa [#allocation9 + $0x1], 1 }

</bundles_post_ra>
